<compile_context>
chip_gen: v7x
topology: tpu7x:2x2x1
jax: 0.10.0
libtpu: 0.0.40
codegen_flags: <defaults>
</compile_context>

<pallas_src>
import functools

import numpy as np
import jax
import jax.numpy as jnp
from jax import lax
from jax.experimental import pallas as pl
from jax.experimental.pallas import tpu as pltpu

_LANE = 128
_SUBLANE = 8


def _round_up(x, m):
    return ((x + m - 1) // m) * m


# ----------------------------------------------------------------------------
# Kernel
# ----------------------------------------------------------------------------
def _ensemble_kernel(x_ref, w_ref, b_ref, o_ref, *, tk, w_resident):
    # grid = (B tiles [parallel], D tiles [reduction, "arbitrary"])
    j = pl.program_id(1)

    @pl.when(j == 0)
    def _init():
        o_ref[...] = jnp.zeros_like(o_ref)

    if w_resident:
        # Whole summed W resident in VMEM; slice the D chunk for this step.
        start = pl.multiple_of(j * tk, tk)
        w = w_ref[:, pl.ds(start, tk)]
    else:
        w = w_ref[...]

    # Lane-dense weights: w is (K, tk); contract the D (lane) axis of both
    # operands: (tb, tk) x (K, tk) -> (tb, K); bf16 inputs, f32 MXU accumulate.
    o_ref[...] += lax.dot_general(
        x_ref[...], w,
        dimension_numbers=(((1,), (1,)), ((), ())),
        preferred_element_type=jnp.float32)

    @pl.when(j == pl.num_programs(1) - 1)
    def _finalize():
        a = o_ref[...] + b_ref[...]                 # summed bias, added once
        a = a - jnp.max(a, axis=-1, keepdims=True)
        e = jnp.exp(a)
        # Exact reciprocal (still EUP) so each row sums to 1 to f32 precision.
        o_ref[...] = e * pl.reciprocal(jnp.sum(e, axis=-1, keepdims=True),
                                       approx=False)


# ----------------------------------------------------------------------------
# Parameter prep (hoisted out of the per-call path)
# ----------------------------------------------------------------------------
def prepare_ensemble_params(weights, biases, *, param_dtype=jnp.bfloat16):
    """Fold the ensemble once: sum_i (x @ W_i + b_i) == x @ W_sum + b_sum.

    weights: (M, D, K); biases: (M, K).
    Returns lane-dense W_sum of shape (K, D) in `param_dtype` and b_sum (1, K)
    in f32.  Call once at model init, not per forward call.
    """
    w_kd = jnp.sum(weights.astype(jnp.float32), axis=0).T.astype(param_dtype)
    b_sum = jnp.sum(biases.astype(jnp.float32), axis=0).reshape(1, -1)
    return w_kd, b_sum


# ----------------------------------------------------------------------------
# Tile selection (VMEM-budget + megacore aware)
# ----------------------------------------------------------------------------
def _pick_tiles(B, D, K, *, x_bytes, w_bytes,
                vmem_budget_bytes, b_tile=None, d_tile=None):
    # B tile: multiple of 8 (full sublane utilization), <= 256, and when B is
    # large enough keep >= 2 programs on the parallel axis so v7x's two
    # TensorCores can both engage.
    if b_tile is not None:
        tb = b_tile
    elif B <= _SUBLANE:
        tb = B
    else:
        tb = min(256, _round_up(B, _SUBLANE))
        if B >= 2 * _SUBLANE:
            tb = min(tb, _round_up((B + 1) // 2, _SUBLANE))
    Bp = _round_up(B, tb)

    # D tile: a single step if it fits the budget (amortizes the ~0.35us
    # per-grid-step overhead); otherwise the largest multiple-of-128 chunk
    # that keeps the double-buffered x tile + W tile inside the budget.
    if d_tile is not None:
        tk = d_tile
    else:
        per_lane_bytes = 2 * tb * x_bytes + 2 * K * w_bytes
        tk_max = max(_LANE,
                     (vmem_budget_bytes // per_lane_bytes) // _LANE * _LANE)
        tk = D if D <= tk_max else tk_max
    Dp = _round_up(D, tk)
    return tb, Bp, tk, Dp


# ----------------------------------------------------------------------------
# Forward
# ----------------------------------------------------------------------------
def ensemble_forward(x_nchw, w_kd, b_sum, *, b_tile=None, d_tile=None,
                     vmem_budget_bytes=24 * 1024 * 1024):
    """x_nchw: (B, C, H, W); w_kd: (K, D) pre-summed lane-dense; b_sum: (1, K)."""
    B = x_nchw.shape[0]
    D = int(np.prod(x_nchw.shape[1:]))
    K, Dw = w_kd.shape
    assert Dw == D, f"weight D {Dw} != input D {D}"

    x_dtype = w_kd.dtype                 # stream x at the weight dtype (bf16)
    x_bytes = jnp.dtype(x_dtype).itemsize
    w_bytes = jnp.dtype(w_kd.dtype).itemsize

    tb, Bp, tk, Dp = _pick_tiles(B, D, K, x_bytes=x_bytes, w_bytes=w_bytes,
                                 vmem_budget_bytes=vmem_budget_bytes,
                                 b_tile=b_tile, d_tile=d_tile)
    nb, nk = Bp // tb, Dp // tk

    x_flat = x_nchw.reshape(B, D).astype(x_dtype)
    if Bp != B or Dp != D:
        x_flat = jnp.pad(x_flat, ((0, Bp - B), (0, Dp - D)))
    if Dp != D:
        w_kd = jnp.pad(w_kd, ((0, 0), (0, Dp - D)))
    b_sum = b_sum.reshape(1, K).astype(jnp.float32)

    # Keep the whole summed W resident when it is small and both grid axes are
    # non-trivial (avoids re-DMAing W tile j for every B tile i).
    w_resident = (nb > 1 and nk > 1 and K * Dp * w_bytes <= (4 << 20))
    if w_resident:
        w_spec = pl.BlockSpec((K, Dp), lambda i, j: (0, 0))
        w_foot = 2 * K * Dp * w_bytes
    else:
        w_spec = pl.BlockSpec((K, tk), lambda i, j: (0, j))
        w_foot = 2 * K * tk * w_bytes

    # Explicit VMEM limit sized from the actual footprint (double-buffered x,
    # W, resident out, bias) + headroom; safe on v5e's 16 MiB scoped default
    # and under v7x's 64 MiB physical VMEM.
    footprint = (2 * tb * tk * x_bytes + w_foot
                 + 2 * tb * K * 4 + 2 * K * 4)
    vmem_limit = int(min(64 << 20, max(2 * footprint, 16 << 20)))

    kernel = functools.partial(_ensemble_kernel, tk=tk, w_resident=w_resident)

    grid_spec = pltpu.PrefetchScalarGridSpec(
        num_scalar_prefetch=0,
        grid=(nb, nk),
        in_specs=[
            pl.BlockSpec((tb, tk), lambda i, j: (i, j)),   # x tile (bf16)
            w_spec,                                        # summed W, lane-dense
            pl.BlockSpec((1, K), lambda i, j: (0, 0)),     # summed bias (f32)
        ],
        out_specs=pl.BlockSpec((tb, K), lambda i, j: (i, 0)),  # resident acc
    )

    out = pl.pallas_call(
        kernel,
        out_shape=jax.ShapeDtypeStruct((Bp, K), jnp.float32),
        grid_spec=grid_spec,
        compiler_params=pltpu.CompilerParams(
            dimension_semantics=("parallel", "arbitrary"),
            vmem_limit_bytes=vmem_limit),
    )(x_flat, w_kd, b_sum)

    return out[:B]


# ----------------------------------------------------------------------------
# References
# ----------------------------------------------------------------------------
def ensemble_reference(x_nchw, weights, biases):
    """Original EnsembleModel semantics in f32 (per-member matmul + sum)."""
    B = x_nchw.shape[0]
    D = int(np.prod(x_nchw.shape[1:]))
    x_flat = x_nchw.reshape(B, D).astype(jnp.float32)
    logits = jnp.einsum("bd,mdk->bk", x_flat, weights.astype(jnp.float32))
    logits = logits + jnp.sum(biases, axis=0)
    return jax.nn.softmax(logits, axis=1)


def reference_from_prepared(x_nchw, w_kd, b_sum):
    """Same bf16-prepared params, f32 math: isolates kernel error from the
    bf16 parameter/input quantization."""
    B = x_nchw.shape[0]
    D = int(np.prod(x_nchw.shape[1:]))
    x_flat = x_nchw.reshape(B, D).astype(w_kd.dtype).astype(jnp.float32)
    logits = x_flat @ w_kd.astype(jnp.float32).T + b_sum.astype(jnp.float32)
    return jax.nn.softmax(logits, axis=1)


# ----------------------------------------------------------------------------
# Demo / self-test
# ----------------------------------------------------------------------------
if __name__ == "__main__":
    B, C, H, W = 2, 4, 16, 16     # NCHW input
    K = 8                         # num classes
    M = 3                         # ensemble size
    D = C * H * W

    key = jax.random.PRNGKey(0)
    kx, kw, kb = jax.random.split(key, 3)
    x = jax.random.normal(kx, (B, C, H, W), dtype=jnp.float32)
    weights = 0.05 * jax.random.normal(kw, (M, D, K), dtype=jnp.float32)
    biases = 0.1 * jax.random.normal(kb, (M, K), dtype=jnp.float32)

    # Hoisted once ("model init"): ensemble fold + lane-dense bf16 layout.
    w_kd, b_sum = prepare_ensemble_params(weights, biases)

    # 1) Default path (toy size -> single D step, single B tile).
    out = jax.block_until_ready(ensemble_forward(x, w_kd, b_sum))
    assert out.shape == (B, K)
    np.testing.assert_allclose(np.asarray(out),
                               np.asarray(reference_from_prepared(x, w_kd, b_sum)),
                               atol=1e-4, rtol=1e-4)
    np.testing.assert_allclose(np.asarray(out),
                               np.asarray(ensemble_reference(x, weights, biases)),
                               atol=5e-2, rtol=5e-2)   # bf16 input quantization
    assert np.allclose(np.asarray(out).sum(axis=1), 1.0, atol=1e-5)

    # 2) Stress the B-tiled (megacore-style, >=2 parallel programs) +
    #    multi-step D-reduction + resident-W path with explicit small tiles.
    B2 = 16
    x2 = jax.random.normal(jax.random.PRNGKey(1), (B2, C, H, W),
                           dtype=jnp.float32)
    out2 = jax.block_until_ready(
        ensemble_forward(x2, w_kd, b_sum, b_tile=8, d_tile=256))
    assert out2.shape == (B2, K)
    np.testing.assert_allclose(np.asarray(out2),
                               np.asarray(reference_from_prepared(x2, w_kd, b_sum)),
                               atol=1e-4, rtol=1e-4)
    np.testing.assert_allclose(np.asarray(out2),
                               np.asarray(ensemble_reference(x2, weights, biases)),
                               atol=5e-2, rtol=5e-2)
    assert np.allclose(np.asarray(out2).sum(axis=1), 1.0, atol=1e-5)

    print("KERNEL_OK")
</pallas_src>

<mosaic_0001>
module attributes {stable_mosaic.version = 11 : i64} {
  func.func @_ensemble_kernel(%arg0: i32, %arg1: i32, %arg2: memref<2x1024xbf16, #tpu.memory_space<vmem>>, %arg3: memref<8x1024xbf16, #tpu.memory_space<vmem>>, %arg4: memref<1x8xf32, #tpu.memory_space<vmem>>, %arg5: memref<2x8xf32, #tpu.memory_space<vmem>>) attributes {dimension_semantics = [#tpu.dimension_semantics<parallel>, #tpu.dimension_semantics<arbitrary>], iteration_bounds = array<i64: 1, 1>, scalar_prefetch = 0 : i64, scratch_operands = 0 : i64, tpu.core_type = #tpu.core_type<tc>, window_params = [{transform_indices = @transform_0, window_bounds = array<i64: 2, 1024>}, {transform_indices = @transform_1, window_bounds = array<i64: 8, 1024>}, {pipeline_mode = #tpu.pipeline_mode<synchronous>, transform_indices = @transform_2, window_bounds = array<i64: 1, 8>}, {transform_indices = @transform_3, window_bounds = array<i64: 2, 8>}]} {
    %c0_i32 = arith.constant 0 : i32
    %0 = arith.cmpi eq, %arg1, %c0_i32 : i32
    %1 = arith.extui %0 : i1 to i32
    %c0_i32_0 = arith.constant 0 : i32
    %2 = arith.cmpi ne, %1, %c0_i32_0 : i32
    scf.if %2 {
      %cst_10 = arith.constant 0.000000e+00 : f32
      %12 = vector.broadcast %cst_10 : f32 to vector<2x8xf32>
      %c0_11 = arith.constant 0 : index
      %c0_12 = arith.constant 0 : index
      %13 = vector.load %arg5[%c0_11, %c0_12] : memref<2x8xf32, #tpu.memory_space<vmem>>, vector<2x8xf32>
      tpu.vector_store %arg5[%c0_11, %c0_12], %12 {strides = array<i32>} : memref<2x8xf32, #tpu.memory_space<vmem>>, vector<2x8xf32>,
    } else {
    }
    %c0 = arith.constant 0 : index
    %c0_1 = arith.constant 0 : index
    %3 = vector.load %arg3[%c0, %c0_1] : memref<8x1024xbf16, #tpu.memory_space<vmem>>, vector<8x1024xbf16>
    %c0_2 = arith.constant 0 : index
    %c0_3 = arith.constant 0 : index
    %4 = vector.load %arg5[%c0_2, %c0_3] : memref<2x8xf32, #tpu.memory_space<vmem>>, vector<2x8xf32>
    %c0_4 = arith.constant 0 : index
    %c0_5 = arith.constant 0 : index
    %5 = vector.load %arg2[%c0_4, %c0_5] : memref<2x1024xbf16, #tpu.memory_space<vmem>>, vector<2x1024xbf16>
    %cst = arith.constant dense<0.000000e+00> : vector<2x8xf32>
    %6 = tpu.matmul %5, %3, %cst {dimension_numbers = #tpu.dot_dimension_numbers<[1], [1], [0], [0], [0, 0, 1, 0], [], []>} : vector<2x1024xbf16>, vector<8x1024xbf16>, vector<2x8xf32> -> vector<2x8xf32>
    %7 = arith.addf %4, %6 : vector<2x8xf32>
    %c0_6 = arith.constant 0 : index
    %c0_7 = arith.constant 0 : index
    %8 = vector.load %arg5[%c0_6, %c0_7] : memref<2x8xf32, #tpu.memory_space<vmem>>, vector<2x8xf32>
    tpu.vector_store %arg5[%c0_6, %c0_7], %7 {strides = array<i32>} : memref<2x8xf32, #tpu.memory_space<vmem>>, vector<2x8xf32>,
    %c0_i32_8 = arith.constant 0 : i32
    %9 = arith.cmpi eq, %arg1, %c0_i32_8 : i32
    %10 = arith.extui %9 : i1 to i32
    %c0_i32_9 = arith.constant 0 : i32
    %11 = arith.cmpi ne, %10, %c0_i32_9 : i32
    scf.if %11 {
      %c0_10 = arith.constant 0 : index
      %c0_11 = arith.constant 0 : index
      %12 = vector.load %arg5[%c0_10, %c0_11] : memref<2x8xf32, #tpu.memory_space<vmem>>, vector<2x8xf32>
      %c0_12 = arith.constant 0 : index
      %c0_13 = arith.constant 0 : index
      %13 = vector.load %arg4[%c0_12, %c0_13] : memref<1x8xf32, #tpu.memory_space<vmem>>, vector<1x8xf32>
      %14 = vector.broadcast %13 : vector<1x8xf32> to vector<2x8xf32>
      %15 = arith.addf %12, %14 : vector<2x8xf32>
      %cst_14 = arith.constant dense<0xFF800000> : vector<2xf32>
      %16 = vector.multi_reduction <maximumf>, %15, %cst_14 [1] : vector<2x8xf32> to vector<2xf32>
      %17 = vector.shape_cast %16 : vector<2xf32> to vector<2x1xf32>
      %18 = vector.broadcast %17 : vector<2x1xf32> to vector<2x8xf32>
      %19 = arith.subf %15, %18 : vector<2x8xf32>
      %20 = math.exp %19 : vector<2x8xf32>
      %cst_15 = arith.constant dense<0.000000e+00> : vector<2xf32>
      %21 = vector.multi_reduction <add>, %20, %cst_15 [1] : vector<2x8xf32> to vector<2xf32>
      %22 = vector.shape_cast %21 : vector<2xf32> to vector<2x1xf32>
      %23 = tpu.reciprocal %22 : vector<2x1xf32> -> vector<2x1xf32>
      %24 = vector.broadcast %23 : vector<2x1xf32> to vector<2x8xf32>
      %25 = arith.mulf %20, %24 : vector<2x8xf32>
      %c0_16 = arith.constant 0 : index
      %c0_17 = arith.constant 0 : index
      %26 = vector.load %arg5[%c0_16, %c0_17] : memref<2x8xf32, #tpu.memory_space<vmem>>, vector<2x8xf32>
      tpu.vector_store %arg5[%c0_16, %c0_17], %25 {strides = array<i32>} : memref<2x8xf32, #tpu.memory_space<vmem>>, vector<2x8xf32>,
    } else {
    }
    return
  }
  func.func @transform_0(%arg0: i32, %arg1: i32) -> (i32, i32) {
    %c0_i32 = arith.constant 0 : i32
    return %arg0, %arg1 : i32, i32
  }
  func.func @transform_1(%arg0: i32, %arg1: i32) -> (i32, i32) {
    %c0_i32 = arith.constant 0 : i32
    %c0_i32_0 = arith.constant 0 : i32
    return %c0_i32, %arg1 : i32, i32
  }
  func.func @transform_2(%arg0: i32, %arg1: i32) -> (i32, i32) {
    %c0_i32 = arith.constant 0 : i32
    %c0_i32_0 = arith.constant 0 : i32
    %c0_i32_1 = arith.constant 0 : i32
    return %c0_i32, %c0_i32_0 : i32, i32
  }
  func.func @transform_3(%arg0: i32, %arg1: i32) -> (i32, i32) {
    %c0_i32 = arith.constant 0 : i32
    %c0_i32_0 = arith.constant 0 : i32
    return %arg0, %c0_i32 : i32, i32
  }
}

</mosaic_0001>

<bundles_post_ra>
// kernel: tpu_custom_call.1
= control target key start
LH: loop header
LB: loop body
LE: loop exit
PB: predicated region body
PF: predicated region fallthrough
CT: control target
= control target key end

     0   :  { %8 = vsyncpa [#allocation3], 0  ;;  %s509_s0 = inlined_call_operand.hbm [shape: bf16[2,1024], index: 0, kind: input, shape index: {}]   ;;  %s510_s1 = inlined_call_operand.hbm [shape: bf16[8,1024], index: 1, kind: input, shape index: {}]   ;;  %s511_s2 = inlined_call_operand.vmem [shape: f32[1,8], index: 2, kind: input, shape index: {}]   ;;  %s512_s3 = inlined_call_operand.hbm [shape: f32[2,8], index: 3, kind: output, shape index: {}]  }
   0x1   :  { %9 = vsyncpa [#allocation6], 0 }
   0x2   :  { %10 = vsyncpa [#allocation4], 0  ;;  %s440_s12 = smov [#allocation2]   ;;  %s441_s14 = smov [#allocation5]  }
   0x3   :  { %s17_s13 = sshll.u32 %s440_s12, 4  ;;  %s27_s15 = sshll.u32 %s441_s14, 4  ;;  %s18_s13 = int_to_ptr.vmem [resolvable:$true] %s17_s13  ;;  %s28_s15 = int_to_ptr.vmem [resolvable:$true] %s27_s15 }
   0x4   :  { %s368_s18 = scalar_lea.hbm %s509_s0, 128 }
   0x5   :  { %p369_p0 = scmp.ne.s32.totalorder %s509_s0, %s368_s18  ;;  %p372_p1 = scmp.lt.u32.totalorder %s368_s18, %s509_s0 }
   0x7   :  { %p374_p2 = pnand %p372_p1, %p369_p0 }
   0x9   :  { %377 = shalt.err (!%p374_p2)
}
   0xa   :  { %s378_s23 = scalar_lea.vmem %s18_s13, 128  ;;  %p383_p4 = scmp.lt.s32.totalorder %s18_s13, %s18_s13 }
   0xb   :  { %p379_p3 = scmp.ne.s32.totalorder %s18_s13, %s378_s23  ;;  %p384_p5 = scmp.lt.s32.totalorder %s378_s23, %s378_s23 }
   0xd   :  { %p385_p6 = por %p384_p5, %p383_p4 }
   0xf   :  { %p386_p7 = pnand %p385_p6, %p379_p3 }
  0x11   :  { %389 = shalt.err (!%p386_p7)
}
  0x12   :  { %20 = dma.hbm_to_vmem [thread:$0]  %s509_s0, 128, %s18_s13, [#allocation3]  }
  0x13   :  { %s390_s28 = scalar_lea.hbm %s510_s1, 512 }
  0x14   :  { %p391_p8 = scmp.ne.s32.totalorder %s510_s1, %s390_s28  ;;  %p394_p9 = scmp.lt.u32.totalorder %s390_s28, %s510_s1 }
  0x16   :  { %p396_p10 = pnand %p394_p9, %p391_p8 }
  0x18   :  { %399 = shalt.err (!%p396_p10)
}
  0x19   :  { %s400_s6 = scalar_lea.vmem %s28_s15, 512  ;;  %p405_p12 = scmp.lt.s32.totalorder %s28_s15, %s28_s15 }
  0x1a   :  { %p401_p11 = scmp.ne.s32.totalorder %s28_s15, %s400_s6  ;;  %p406_p13 = scmp.lt.s32.totalorder %s400_s6, %s400_s6 }
  0x1c   :  { %p407_p0 = por %p406_p13, %p405_p12 }
  0x1e   :  { %p408_p1 = pnand %p407_p0, %p401_p11 }
  0x20   :  { %411 = shalt.err (!%p408_p1)
}
  0x21   :  { %30 = dma.hbm_to_vmem [thread:$0]  %s510_s1, 512, %s28_s15, [#allocation6]  }
  0x22   :  { %434 = dma.done.wait [#allocation3], 128  }
  0x23   :  { %435 = vsyncadd [#allocation3], 4294967168 }
  0x24   :  { %436 = dma.done.wait [#allocation6], 512  }
  0x25   :  { %437 = vsyncadd [#allocation6], 4294966784  ;;  %v57_v0 = vlaneseq  ;;  %v442_v1 = vmov 1966171168   ;;  %v46_v6 = vld [vmem:[#allocation5] sm:$0xff]  ;;  %v47_v7 = vld [vmem:[#allocation5 + $0x8] sm:$0xff] }
  0x26   :  { %v55_v2 = vunpack.c.l.s4 %v442_v1  ;;  %v51_v8 = vld [vmem:[#allocation2] sm:$0xff]  ;;  %v342_v9 = vcombine.high %v46_v6, %v46_v6  ;;  %v344_v10 = vcombine.high %v47_v7, %v47_v7  ;;  %v341_v11 = vcombine.low %v46_v6, %v46_v6  ;;  %v48_v13 = vld [vmem:[#allocation5 + $0x10] sm:$0xff]  ;;  %s444_s9 = smov [#allocation7]  }
  0x27   :  { %v58_v3 = vshrl.u32 %v57_v0, 7  ;;  %v343_v12 = vcombine.low %v47_v7, %v47_v7  ;;  %v49_v14 = vld [vmem:[#allocation5 + $0x18] sm:$0xff]  ;;  %v53_v15 = vcombine.high %v51_v8, %v51_v8  ;;  %v346_v17 = vcombine.high %v48_v13, %v48_v13  ;;  %s331_s10 = sshll.u32 %s444_s9, 4  ;;  %s332_s10 = int_to_ptr.vmem [resolvable:$true] %s331_s10 }
  0x28   :  { %v56_v4 = vunpack.c.0.s8 %v55_v2  ;;  %138 = vmatprep.subr.bf16.mxu0 %v342_v9  ;;  %178 = vmatprep.subr.bf16.mxu1 %v344_v10  ;;  %v348_v18 = vcombine.high %v49_v14, %v49_v14  ;;  %v345_v26 = vcombine.low %v48_v13, %v48_v13  ;;  %v347_v27 = vcombine.low %v49_v14, %v49_v14  ;;  %v349_v54 = vld [vmem:[%s511_s2] ss:$0 sm:$0xff]  ;;  %s412_s2 = scalar_lea.vmem %s332_s10, 32  ;;  %p417_p3 = scmp.lt.s32.totalorder %s332_s10, %s332_s10 }
  0x29   :  { %139 = vmatpush1.bf16.xpose.msra.mxu0 %v341_v11  ;;  %179 = vmatpush1.bf16.xpose.msra.mxu1 %v343_v12  ;;  %vm44_vm0 = vcmask 58368   ;;  %v443_v32 = vmov 0.0   ;;  %p413_p2 = scmp.ne.s32.totalorder %s332_s10, %s412_s2  ;;  %p418_p4 = scmp.lt.s32.totalorder %s412_s2, %s412_s2 }
  0x2a   :  { %v59_v5 = vsub.s32 %v56_v4, %v58_v3  ;;  %218 = vmatprep.subr.bf16.mxu0 %v346_v17  ;;  %258 = vmatprep.subr.bf16.mxu1 %v348_v18  ;;  %45 = vst.msk [vmem:[#allocation7] sm:$0x3] %vm44_vm0, %v443_v32 }
  0x2b   :  { %p419_p5 = por %p418_p4, %p417_p3 }
  0x2c   :  { %v60_v16 = vrot.slane %v51_v8, %v59_v5  ;;  %v67_v21 = vrot.slane %v53_v15, %v59_v5 }
  0x2d   :  { %p420_p6 = pnand %p419_p5, %p413_p2 }
  0x2e   :  { %v68_v19 = vcombine.high %v60_v16, %v60_v16  ;;  %v76_v20 = vrot.slane %v60_v16, %v59_v5  ;;  %v69_v23 = vcombine.high %v67_v21, %v67_v21  ;;  %v83_v30 = vrot.slane %v67_v21, %v59_v5 }
  0x30   :  { %v90_v22 = vrot.slane %v68_v19, %v59_v5  ;;  %v98_v24 = vcombine.high %v76_v20, %v76_v20  ;;  %v97_v28 = vrot.slane %v69_v23, %v59_v5  ;;  %v99_v31 = vcombine.high %v83_v30, %v83_v30 }
  0x31   :  { %v50_v47 = vld [vmem:[#allocation7] sm:$0x3] }
  0x32   :  { %170 = vmatprep.mubr.bf16.mxu0 %v90_v22  ;;  %v100_v25 = vcombine.high %v90_v22, %v90_v22  ;;  %v101_v29 = vcombine.high %v97_v28, %v97_v28 }
  0x33   :  { %171 = vmatmul.mubr.bf16.vlgmr.msra.gmra.mrb[0].mxu0 %v76_v20 }
  0x34   :  { %210 = vmatprep.mubr.bf16.mxu1 %v100_v25  ;;  %219 = vmatpush1.bf16.xpose.msra.mxu0 %v345_v26 }
  0x35   :  { %211 = vmatmul.mubr.bf16.vlgmr.msra.gmra.mrb[0].mxu1 %v98_v24  ;;  %250 = vmatprep.mubr.bf16.mxu0 %v97_v28 }
  0x36   :  { %259 = vmatpush1.bf16.xpose.msra.mxu1 %v347_v27  ;;  %290 = vmatprep.mubr.bf16.mxu1 %v101_v29 }
  0x3b   :  { %251 = vmatmul.mubr.bf16.vlgmr.msra.gmra.mrb[4].mxu0 %v83_v30 }
  0x3d   :  { %291 = vmatmul.mubr.bf16.vlgmr.msra.gmra.mrb[4].mxu1 %v99_v31 }
 0x106   :  { %v172_v33 = vpop.f32.mrb[0].mxu0 }
 0x107   :  { %v174_v36 = vpop.f32.mrb[1].mxu0 }
 0x108   :  { %v212_v34 = vpop.f32.mrb[0].mxu1  ;;  %v175_v38 = vpop.f32.mrb[2].mxu0 }
 0x109   :  { %v213_v35 = vadd.f32 %v212_v34, %v172_v33  ;;  %v214_v37 = vpop.f32.mrb[1].mxu1  ;;  %v176_v40 = vpop.f32.mrb[3].mxu0 }
 0x10a   :  { %v215_v39 = vpop.f32.mrb[2].mxu1 }
 0x10b   :  { %v216_v41 = vpop.f32.mrb[3].mxu1 }
 0x10e   :  { %v252_v42 = vpop.f32.mrb[4].mxu0 }
 0x10f   :  { %v253_v44 = vadd.f32 %v252_v42, %v213_v35  ;;  %v254_v45 = vpop.f32.mrb[5].mxu0 }
 0x110   :  { %v292_v43 = vpop.f32.mrb[4].mxu1  ;;  %v255_v48 = vpop.f32.mrb[6].mxu0 }
 0x111   :  { %v294_v46 = vpop.f32.mrb[5].mxu1  ;;  %v293_v50 = vadd.f32 %v292_v43, %v253_v44  ;;  %v256_v51 = vpop.f32.mrb[7].mxu0 }
 0x112   :  { %v295_v49 = vpop.f32.mrb[6].mxu1 }
 0x113   :  { %v296_v52 = vpop.f32.mrb[7].mxu1  ;;  %v298_v53 = vadd.f32 %v293_v50, %v50_v47 }
 0x115   :  { %300 = vst.msk [vmem:[#allocation7] sm:$0x3] %vm44_vm0, %v298_v53 }
 0x11c   :  { %v304_v55 = vld [vmem:[#allocation7] sm:$0x3] }
 0x11d   :  { %v312_v56 = vadd.f32 %v349_v54, %v304_v55 }
 0x11f   :  { %v313_v57 = vsel %vm44_vm0, %v312_v56, -inf }
 0x120   :  { %314 = vmax.xlane.f32.xlu0 %v313_v57 }
 0x1ad   :  { %v315_v58 = vpop.xlane.xlu0 %314 }
 0x1ae   :  { %v316_v59 = vsub.f32 %v312_v56, %v315_v58 }
 0x1b0   :  { %v317_v60 = vmul.f32 1.442695, %v316_v59 }
 0x1b2   :  { %364 = vpow2.f32 %v317_v60 }
 0x1bc   :  { %v365_v61 = vpop.eup %364 }
 0x1bd   :  { %v319_v62 = vsel %vm44_vm0, %v365_v61, 0.0 }
 0x1be   :  { %320 = vadd.xlane.f32.xlu0 %v319_v62 }
 0x24b   :  { %v321_v63 = vpop.xlane.xlu0 %320 }
 0x24c   :  { %366 = vrcp.f32 %v321_v63 }
 0x256   :  { %v367_v0 = vpop.eup %366 }
 0x257   :  { %v323_v1 = vmul.f32 %v367_v0, %v365_v61 }
 0x259   :  { %324 = vst.msk [vmem:[#allocation7] sm:$0x3] %vm44_vm0, %v323_v1 }
 0x25a   :  { %423 = shalt.err (!%p420_p6)
}
 0x25b   :  { %s424_s13 = scalar_lea.hbm %s512_s3, 32 }
 0x25c   :  { %p425_p7 = scmp.ne.s32.totalorder %s512_s3, %s424_s13  ;;  %p428_p8 = scmp.lt.u32.totalorder %s424_s13, %s512_s3 }
 0x25e   :  { %p430_p9 = pnand %p428_p8, %p425_p7 }
 0x260   :  { %433 = shalt.err (!%p430_p9)
}
 0x261   :  { %334 = dma.vmem_to_hbm [thread:$0]  %s332_s10, 32, %s512_s3, [#allocation4]  }
 0x262   :  { %438 = dma.done.wait [#allocation4], 32  }
 0x263   :  { %439 = vsyncadd [#allocation4], 4294967264 }
 0x264   :  { %338 = vsyncpa [#allocation3], 1 }
 0x265   :  { %339 = vsyncpa [#allocation6], 1 }
 0x266   :  { %340 = vsyncpa [#allocation4], 1 }

</bundles_post_ra>
